<compile_context>
chip_gen: v6e
topology: v6e:2x2x1
jax: 0.10.0
libtpu: 0.0.40
codegen_flags: <defaults>
</compile_context>

<pallas_src>
import functools

import jax
import jax.numpy as jnp
import numpy as np
from jax import lax
from jax.experimental import pallas as pl
from jax.experimental.pallas import tpu as pltpu


def _block_diag_1x1(w, width):
    """w: (Ci, Co) 1x1-conv weight -> (width*Ci, width*Co) block-diagonal GEMM
    weight acting on the packed (rows, width*Ci) activation layout."""
    ci, co = w.shape
    eye = jnp.eye(width, dtype=w.dtype)
    big = jnp.einsum("xy,io->xiyo", eye, w)          # (width, Ci, width, Co)
    return big.reshape(width * ci, width * co)


def _pick_batch_block(n, rows_per_img, mid_lanes, *,
                      max_rows=512, max_act_bytes=2 << 20):
    """Largest divisor of n whose per-step packed expanded activation
    (rows x mid_lanes f32) stays within a small VMEM budget.  Bigger steps
    amortize the ~0.35us/step pipeline cost and raise MXU M occupancy."""
    best = None
    for b in range(1, n + 1):
        if n % b:
            continue
        rows = b * rows_per_img
        if not (rows % 8 == 0 or b == n):      # keep the (8,128) tiling happy
            continue
        if rows <= max_rows and rows * mid_lanes * 4 <= max_act_bytes:
            best = b
    return best if best is not None else n


def _make_mbconv_kernel(BH2, H, W, Cin, Coup, Cout, k, use_expand, use_skip):
    pad = (k - 1) // 2
    L2 = W * Coup                 # lanes of one expanded image row
    L = 2 * L2                    # packed lane width (row pair)
    rows_per_img = H // 2         # packed rows per image

    def kernel(x_ref, we_ref, be_ref, wd_ref, bd_ref, wp_ref, bp_ref, o_ref):
        x2 = x_ref[...]                                    # (BH2, 2*W*Cin) f32

        # ---- expand 1x1 conv + ReLU6 (block-diag GEMM, bf16 MXU, f32 acc) ----
        if use_expand:
            h = jnp.dot(x2.astype(jnp.bfloat16), we_ref[...],
                        preferred_element_type=jnp.float32)
            h = jnp.clip(h + be_ref[...], 0.0, 6.0)        # (BH2, L) f32
        else:
            h = x2                                         # Cin == Coup

        # ---- hoisted masks (outside the k*k tap loop) ----
        multi_img = BH2 > rows_per_img
        rowi = (lax.broadcasted_iota(jnp.int32, (BH2, 1), 0) % rows_per_img
                if multi_img else None)

        def row_shift(v, r):
            """result[p] = v[p + r] within each image, zero outside."""
            if r == 0:
                return v
            if r > 0:
                s = jnp.concatenate(
                    [v[r:, :], jnp.zeros((r, L), v.dtype)], axis=0)
            else:
                s = jnp.concatenate(
                    [jnp.zeros((-r, L), v.dtype), v[:BH2 + r, :]], axis=0)
            if multi_img:   # mask rows that would leak across image boundaries
                valid = (rowi + r >= 0) & (rowi + r < rows_per_img)
                s = jnp.where(valid, s, 0.0)
            return s

        need_swap = any(((dy - pad) % 2) != 0 for dy in range(k))
        if need_swap:
            # swap the two image rows held in each packed row (lane halves)
            swap = pltpu.roll(h, shift=L2, axis=1)
            lane = lax.broadcasted_iota(jnp.int32, (1, L), 1)
            is_par0 = lane < L2

        # ---- depthwise kxk conv + ReLU6 (roll + FMA) ----
        # dx shifts are XLU lane rolls; the x-halo validity is pre-folded into
        # the tiled tap weights wrapper-side, so each tap is roll + FMA.
        # TODO(synk): load taps pre-broadcast across sublanes via a stride-0
        # slice once available; the (1, L) slice broadcasts inside the FMA.
        acc = jnp.zeros((BH2, L), jnp.float32)
        for dy in range(k):
            oy = dy - pad
            if oy == 0:
                hv = h
            elif oy % 2 == 0:
                hv = row_shift(h, oy // 2)         # even: whole packed rows
            else:                                  # odd: swap halves + shift
                hv = jnp.where(is_par0,
                               row_shift(swap, (oy - 1) // 2),
                               row_shift(swap, (oy + 1) // 2))
            for dx in range(k):
                ox = dx - pad
                sw = pltpu.roll(hv, shift=(-ox * Coup) % L, axis=1) if ox else hv
                acc = acc + sw * wd_ref[pl.ds(dy * k + dx, 1), :]
        acc = jnp.clip(acc + bd_ref[...], 0.0, 6.0)

        # ---- project 1x1 conv (block-diag GEMM) + residual ----
        p = jnp.dot(acc.astype(jnp.bfloat16), wp_ref[...],
                    preferred_element_type=jnp.float32) + bp_ref[...]
        if use_skip:
            p = p + x2                                     # Cin == Cout
        o_ref[...] = p.astype(o_ref.dtype)

    return kernel


def mbconv_forward(x, params, *, k, stride, expand_ratio, batch_block=None):
    """x: (N, H, W, Cin) float32 NHWC.  params = (we, be, wd, bd, wp, bp) with
    we:(Cin,Coup) be:(1,Coup) wd:(k,k,Coup) bd:(1,Coup) wp:(Coup,Cout) bp:(1,Cout)."""
    N, H, W, Cin = x.shape
    we, be, wd, bd, wp, bp = params
    Coup = wd.shape[-1]
    Cout = wp.shape[-1]
    pad = (k - 1) // 2
    use_expand = expand_ratio != 1
    use_skip = (stride == 1) and (Cin == Cout)

    assert stride == 1, "stride must be 1"
    assert H % 2 == 0, "row-pair packing requires even H"
    if use_expand:
        assert we.shape == (Cin, Coup), "expand weight shape mismatch"
    else:
        assert Cin == Coup, "expand_ratio==1 requires Cin == Coup"

    groups = 2 * W                 # packed lane groups (row_parity, x)
    L_in, L_mid, L_out = groups * Cin, groups * Coup, groups * Cout

    # Block-diagonal 1x1 weights are O(W^2) -- guard the VMEM budget.
    wbytes = 2 * (L_in * L_mid + L_mid * L_out)           # bf16
    assert wbytes <= (8 << 20), (
        f"block-diagonal 1x1 weights ({wbytes} B) exceed the VMEM budget; "
        "a W-tiled GEMM path is required for this shape")

    rows_per_img = H // 2
    if batch_block is None:
        batch_block = _pick_batch_block(N, rows_per_img, L_mid)
    assert N % batch_block == 0
    b_blk = batch_block
    BH2 = b_blk * rows_per_img

    f32, bf16 = jnp.float32, jnp.bfloat16

    # ---- pack parameters into lane-dense layouts (tiny; wrapper-side) ----
    if use_expand:
        we_big = _block_diag_1x1(we.astype(f32), groups).astype(bf16)
        be_row = jnp.tile(be.reshape(1, Coup).astype(f32), (1, groups))
    else:
        we_big = jnp.zeros((8, 128), bf16)                 # unused dummy
        be_row = jnp.zeros((1, 128), f32)                  # unused dummy

    # Depthwise taps tiled over (row_parity, x) with the x-halo validity
    # folded in, so the in-kernel tap is a plain roll + FMA.
    x_pos = jnp.arange(groups, dtype=jnp.int32) % W                  # (2W,)
    ox_tap = (jnp.arange(k * k, dtype=jnp.int32) % k) - pad          # (k*k,)
    src_x = x_pos[None, :] + ox_tap[:, None]                         # (k*k, 2W)
    x_valid = ((src_x >= 0) & (src_x < W)).astype(f32)
    wd_row = (jnp.tile(wd.reshape(k * k, Coup).astype(f32), (1, groups))
              * jnp.repeat(x_valid, Coup, axis=1))                   # (k*k, L_mid)
    bd_row = jnp.tile(bd.reshape(1, Coup).astype(f32), (1, groups))  # (1, L_mid)

    wp_big = _block_diag_1x1(wp.astype(f32), groups).astype(bf16)    # (L_mid, L_out)
    bp_row = jnp.tile(bp.reshape(1, Cout).astype(f32), (1, groups))  # (1, L_out)

    # packed activation view: rows = (n, y//2), lanes = (y%2, x, c)
    x2 = x.reshape(N * rows_per_img, L_in)

    kernel = _make_mbconv_kernel(BH2, H, W, Cin, Coup, Cout, k,
                                 use_expand, use_skip)

    flops = 2 * N * H * W * ((Cin * Coup if use_expand else 0)
                             + k * k * Coup + Coup * Cout)
    bytes_accessed = ((N * rows_per_img) * (L_in + L_out) * 4
                      + (L_in * L_mid + L_mid * L_out) * 2
                      + (k * k + 3) * L_mid * 4)

    out2 = pl.pallas_call(
        kernel,
        out_shape=jax.ShapeDtypeStruct((N * rows_per_img, L_out), x.dtype),
        grid=(N // b_blk,),
        in_specs=[
            pl.BlockSpec((BH2, L_in), lambda n: (n, 0)),
            pl.BlockSpec(we_big.shape, lambda n: (0, 0)),
            pl.BlockSpec(be_row.shape, lambda n: (0, 0)),
            pl.BlockSpec(wd_row.shape, lambda n: (0, 0)),
            pl.BlockSpec(bd_row.shape, lambda n: (0, 0)),
            pl.BlockSpec(wp_big.shape, lambda n: (0, 0)),
            pl.BlockSpec(bp_row.shape, lambda n: (0, 0)),
        ],
        out_specs=pl.BlockSpec((BH2, L_out), lambda n: (n, 0)),
        compiler_params=pltpu.CompilerParams(
            dimension_semantics=("parallel",),
            vmem_limit_bytes=32 * 1024 * 1024),
        cost_estimate=pl.CostEstimate(flops=int(flops), transcendentals=0,
                                      bytes_accessed=int(bytes_accessed)),
        input_output_aliases={0: 0} if use_skip else {},
    )(x2, we_big, be_row, wd_row, bd_row, wp_big, bp_row)

    return out2.reshape(N, H, W, Cout)


def mbconv_reference(x, params, *, k, stride, expand_ratio, mxu_bf16=True):
    """Pure-JAX NHWC reference (mirrors the PyTorch forward).  With
    mxu_bf16=True the two 1x1 convs use bf16 operands / f32 accumulation,
    matching the kernel's MXU path; everything else stays f32."""
    we, be, wd, bd, wp, bp = params
    Cin = x.shape[-1]
    Coup = wd.shape[-1]
    Cout = wp.shape[-1]
    pad = (k - 1) // 2

    def conv1x1(h, w):
        ci, co = w.shape
        dn = lax.conv_dimension_numbers(h.shape, (1, 1, ci, co),
                                        ("NHWC", "HWIO", "NHWC"))
        if mxu_bf16:
            h = h.astype(jnp.bfloat16)
            w = w.astype(jnp.bfloat16)
        return lax.conv_general_dilated(h, w.reshape(1, 1, ci, co), (1, 1),
                                        "VALID", dimension_numbers=dn,
                                        preferred_element_type=jnp.float32)

    h = x
    if expand_ratio != 1:
        h = jnp.clip(conv1x1(x, we) + be.reshape(1, 1, 1, Coup), 0.0, 6.0)
    dn = lax.conv_dimension_numbers(h.shape, (k, k, 1, Coup),
                                    ("NHWC", "HWIO", "NHWC"))
    h = lax.conv_general_dilated(h, wd.reshape(k, k, 1, Coup),
                                 (stride, stride), [(pad, pad), (pad, pad)],
                                 dimension_numbers=dn,
                                 feature_group_count=Coup,
                                 preferred_element_type=jnp.float32)
    h = jnp.clip(h + bd.reshape(1, 1, 1, Coup), 0.0, 6.0)
    h = conv1x1(h, wp) + bp.reshape(1, 1, 1, Cout)
    if stride == 1 and Cin == Cout:
        h = h + x
    return h


if __name__ == "__main__":
    # Shapes consistent with MBConvBlock(inp=4, final_oup=4, k=3, s=1, expand_ratio=4)
    N, H, W = 2, 16, 16
    inp, final_oup, k, s, expand_ratio = 4, 4, 3, 1, 4
    oup = inp * expand_ratio

    key = jax.random.PRNGKey(0)
    ks = jax.random.split(key, 7)
    x = jax.random.normal(ks[0], (N, H, W, inp), jnp.float32)

    we = jax.random.normal(ks[1], (inp, oup), jnp.float32) * 0.2
    be = jax.random.normal(ks[2], (1, oup), jnp.float32) * 0.1
    wd = jax.random.normal(ks[3], (k, k, oup), jnp.float32) * 0.2
    bd = jax.random.normal(ks[4], (1, oup), jnp.float32) * 0.1
    wp = jax.random.normal(ks[5], (oup, final_oup), jnp.float32) * 0.2
    bp = jax.random.normal(ks[6], (1, final_oup), jnp.float32) * 0.1
    params = (we, be, wd, bd, wp, bp)

    # Reference with matching bf16 MXU operands (the kernel's only
    # reduced-precision step); depthwise / bias / residual stay f32 in both.
    ref = mbconv_reference(x, params, k=k, stride=s,
                           expand_ratio=expand_ratio, mxu_bf16=True)

    run = jax.jit(functools.partial(mbconv_forward, k=k, stride=s,
                                    expand_ratio=expand_ratio))
    out = jax.block_until_ready(run(x, params))

    np.testing.assert_allclose(np.asarray(out), np.asarray(ref),
                               rtol=1e-2, atol=1e-2)
    print("KERNEL_OK")
</pallas_src>

<mosaic_0001>
module attributes {stable_mosaic.version = 11 : i64} {
  func.func @kernel(%arg0: i32, %arg1: memref<16x128xf32, #tpu.memory_space<vmem>>, %arg2: memref<128x512xbf16, #tpu.memory_space<vmem>>, %arg3: memref<1x512xf32, #tpu.memory_space<vmem>>, %arg4: memref<9x512xf32, #tpu.memory_space<vmem>>, %arg5: memref<1x512xf32, #tpu.memory_space<vmem>>, %arg6: memref<512x128xbf16, #tpu.memory_space<vmem>>, %arg7: memref<1x128xf32, #tpu.memory_space<vmem>>, %arg8: memref<16x128xf32, #tpu.memory_space<vmem>>) attributes {dimension_semantics = [#tpu.dimension_semantics<parallel>], iteration_bounds = array<i64: 1>, scalar_prefetch = 0 : i64, scratch_operands = 0 : i64, tpu.core_type = #tpu.core_type<tc>, window_params = [{transform_indices = @transform_0, window_bounds = array<i64: 16, 128>}, {pipeline_mode = #tpu.pipeline_mode<synchronous>, transform_indices = @transform_1, window_bounds = array<i64: 128, 512>}, {pipeline_mode = #tpu.pipeline_mode<synchronous>, transform_indices = @transform_2, window_bounds = array<i64: 1, 512>}, {pipeline_mode = #tpu.pipeline_mode<synchronous>, transform_indices = @transform_3, window_bounds = array<i64: 9, 512>}, {pipeline_mode = #tpu.pipeline_mode<synchronous>, transform_indices = @transform_4, window_bounds = array<i64: 1, 512>}, {pipeline_mode = #tpu.pipeline_mode<synchronous>, transform_indices = @transform_5, window_bounds = array<i64: 512, 128>}, {pipeline_mode = #tpu.pipeline_mode<synchronous>, transform_indices = @transform_6, window_bounds = array<i64: 1, 128>}, {transform_indices = @transform_7, window_bounds = array<i64: 16, 128>}]} {
    %c0 = arith.constant 0 : index
    %c0_0 = arith.constant 0 : index
    %0 = vector.load %arg1[%c0, %c0_0] : memref<16x128xf32, #tpu.memory_space<vmem>>, vector<16x128xf32>
    %1 = arith.truncf %0 : vector<16x128xf32> to vector<16x128xbf16>
    %c0_1 = arith.constant 0 : index
    %c0_2 = arith.constant 0 : index
    %2 = vector.load %arg2[%c0_1, %c0_2] : memref<128x512xbf16, #tpu.memory_space<vmem>>, vector<128x512xbf16>
    %cst = arith.constant dense<0.000000e+00> : vector<16x512xf32>
    %3 = tpu.matmul %1, %2, %cst {dimension_numbers = #tpu.dot_dimension_numbers<[1], [0], [0], [1], [0, 0, 1, 1], [], []>} : vector<16x128xbf16>, vector<128x512xbf16>, vector<16x512xf32> -> vector<16x512xf32>
    %c0_3 = arith.constant 0 : index
    %c0_4 = arith.constant 0 : index
    %4 = vector.load %arg3[%c0_3, %c0_4] : memref<1x512xf32, #tpu.memory_space<vmem>>, vector<1x512xf32>
    %5 = vector.broadcast %4 : vector<1x512xf32> to vector<16x512xf32>
    %6 = arith.addf %3, %5 : vector<16x512xf32>
    %cst_5 = arith.constant 0.000000e+00 : f32
    %cst_6 = arith.constant 6.000000e+00 : f32
    %7 = vector.broadcast %cst_5 : f32 to vector<16x512xf32>
    %8 = arith.maximumf %7, %6 : vector<16x512xf32>
    %9 = vector.broadcast %cst_6 : f32 to vector<16x512xf32>
    %10 = arith.minimumf %9, %8 : vector<16x512xf32>
    %11 = tpu.iota {dimensions = array<i32: 0>} : vector<16x1xi32>
    %c8_i32 = arith.constant 8 : i32
    %c0_i32 = arith.constant 0 : i32
    %12 = arith.cmpi eq, %c8_i32, %c0_i32 : i32
    %c1_i32 = arith.constant 1 : i32
    %13 = arith.select %12, %c1_i32, %c8_i32 : i32
    %14 = vector.broadcast %13 : i32 to vector<16x1xi32>
    %15 = arith.remsi %11, %14 : vector<16x1xi32>
    %c0_i32_7 = arith.constant 0 : i32
    %16 = vector.broadcast %c0_i32_7 : i32 to vector<16x1xi32>
    %17 = arith.cmpi ne, %15, %16 : vector<16x1xi32>
    %c0_i32_8 = arith.constant 0 : i32
    %18 = vector.broadcast %c0_i32_8 : i32 to vector<16x1xi32>
    %19 = arith.cmpi slt, %15, %18 : vector<16x1xi32>
    %c0_i32_9 = arith.constant 0 : i32
    %20 = arith.cmpi slt, %13, %c0_i32_9 : i32
    %21 = vector.broadcast %20 : i1 to vector<16x1xi1>
    %22 = vector.broadcast %21 : vector<16x1xi1> to vector<16x1xi1>
    %23 = arith.xori %19, %22 : vector<16x1xi1>
    %24 = arith.andi %23, %17 : vector<16x1xi1>
    %25 = vector.broadcast %13 : i32 to vector<16x1xi32>
    %26 = arith.addi %15, %25 : vector<16x1xi32>
    %27 = arith.select %24, %26, %15 : vector<16x1xi1>, vector<16x1xi32>
    %c256_i32 = arith.constant 256 : i32
    %28 = tpu.dynamic_rotate %10 by %c256_i32 dim 1 : vector<16x512xf32>, i32 -> vector<16x512xf32>
    %29 = tpu.iota {dimensions = array<i32: 1>} : vector<1x512xi32>
    %c256_i32_10 = arith.constant 256 : i32
    %30 = vector.broadcast %c256_i32_10 : i32 to vector<1x512xi32>
    %31 = arith.cmpi slt, %29, %30 : vector<1x512xi32>
    %cst_11 = arith.constant 0.000000e+00 : f32
    %32 = vector.broadcast %cst_11 : f32 to vector<16x512xf32>
    %cst_12 = arith.constant 0.000000e+00 : f32
    %33 = vector.broadcast %cst_12 : f32 to vector<1x512xf32>
    %34 = vector.extract_strided_slice %28 {offsets = [0, 0], sizes = [15, 512], strides = [1, 1]} : vector<16x512xf32> to vector<15x512xf32>
    %35 = tpu.concatenate %33, %34 in 0 : vector<1x512xf32>, vector<15x512xf32> -> vector<16x512xf32>
    %c-1_i32 = arith.constant -1 : i32
    %36 = vector.broadcast %c-1_i32 : i32 to vector<16x1xi32>
    %37 = arith.addi %27, %36 : vector<16x1xi32>
    %c0_i32_13 = arith.constant 0 : i32
    %38 = vector.broadcast %c0_i32_13 : i32 to vector<16x1xi32>
    %39 = arith.cmpi sge, %37, %38 : vector<16x1xi32>
    %c-1_i32_14 = arith.constant -1 : i32
    %40 = vector.broadcast %c-1_i32_14 : i32 to vector<16x1xi32>
    %41 = arith.addi %27, %40 : vector<16x1xi32>
    %c8_i32_15 = arith.constant 8 : i32
    %42 = vector.broadcast %c8_i32_15 : i32 to vector<16x1xi32>
    %43 = arith.cmpi slt, %41, %42 : vector<16x1xi32>
    %44 = arith.andi %39, %43 : vector<16x1xi1>
    %cst_16 = arith.constant 0.000000e+00 : f32
    %45 = vector.shape_cast %44 : vector<16x1xi1> to vector<16x1xi1>
    %46 = vector.broadcast %45 : vector<16x1xi1> to vector<16x512xi1>
    %47 = vector.broadcast %cst_16 : f32 to vector<16x512xf32>
    %48 = arith.select %46, %35, %47 : vector<16x512xi1>, vector<16x512xf32>
    %49 = vector.shape_cast %31 : vector<1x512xi1> to vector<1x512xi1>
    %50 = vector.broadcast %49 : vector<1x512xi1> to vector<16x512xi1>
    %51 = arith.select %50, %48, %28 : vector<16x512xi1>, vector<16x512xf32>
    %c16_i32 = arith.constant 16 : i32
    %52 = tpu.dynamic_rotate %51 by %c16_i32 dim 1 : vector<16x512xf32>, i32 -> vector<16x512xf32>
    %c0_17 = arith.constant 0 : index
    %c0_18 = arith.constant 0 : index
    %53 = vector.load %arg4[%c0_17, %c0_18] : memref<9x512xf32, #tpu.memory_space<vmem>>, vector<1x512xf32>
    %54 = vector.broadcast %53 : vector<1x512xf32> to vector<16x512xf32>
    %55 = arith.mulf %52, %54 : vector<16x512xf32>
    %56 = arith.addf %32, %55 : vector<16x512xf32>
    %c1 = arith.constant 1 : index
    %c0_19 = arith.constant 0 : index
    %57 = vector.load %arg4[%c1, %c0_19] : memref<9x512xf32, #tpu.memory_space<vmem>>, vector<1x512xf32>
    %58 = vector.broadcast %57 : vector<1x512xf32> to vector<16x512xf32>
    %59 = arith.mulf %51, %58 : vector<16x512xf32>
    %60 = arith.addf %56, %59 : vector<16x512xf32>
    %c496_i32 = arith.constant 496 : i32
    %61 = tpu.dynamic_rotate %51 by %c496_i32 dim 1 : vector<16x512xf32>, i32 -> vector<16x512xf32>
    %c2 = arith.constant 2 : index
    %c0_20 = arith.constant 0 : index
    %62 = vector.load %arg4[%c2, %c0_20] : memref<9x512xf32, #tpu.memory_space<vmem>>, vector<1x512xf32>
    %63 = vector.broadcast %62 : vector<1x512xf32> to vector<16x512xf32>
    %64 = arith.mulf %61, %63 : vector<16x512xf32>
    %65 = arith.addf %60, %64 : vector<16x512xf32>
    %c16_i32_21 = arith.constant 16 : i32
    %66 = tpu.dynamic_rotate %10 by %c16_i32_21 dim 1 : vector<16x512xf32>, i32 -> vector<16x512xf32>
    %c3 = arith.constant 3 : index
    %c0_22 = arith.constant 0 : index
    %67 = vector.load %arg4[%c3, %c0_22] : memref<9x512xf32, #tpu.memory_space<vmem>>, vector<1x512xf32>
    %68 = vector.broadcast %67 : vector<1x512xf32> to vector<16x512xf32>
    %69 = arith.mulf %66, %68 : vector<16x512xf32>
    %70 = arith.addf %65, %69 : vector<16x512xf32>
    %c4 = arith.constant 4 : index
    %c0_23 = arith.constant 0 : index
    %71 = vector.load %arg4[%c4, %c0_23] : memref<9x512xf32, #tpu.memory_space<vmem>>, vector<1x512xf32>
    %72 = vector.broadcast %71 : vector<1x512xf32> to vector<16x512xf32>
    %73 = arith.mulf %10, %72 : vector<16x512xf32>
    %74 = arith.addf %70, %73 : vector<16x512xf32>
    %c496_i32_24 = arith.constant 496 : i32
    %75 = tpu.dynamic_rotate %10 by %c496_i32_24 dim 1 : vector<16x512xf32>, i32 -> vector<16x512xf32>
    %c5 = arith.constant 5 : index
    %c0_25 = arith.constant 0 : index
    %76 = vector.load %arg4[%c5, %c0_25] : memref<9x512xf32, #tpu.memory_space<vmem>>, vector<1x512xf32>
    %77 = vector.broadcast %76 : vector<1x512xf32> to vector<16x512xf32>
    %78 = arith.mulf %75, %77 : vector<16x512xf32>
    %79 = arith.addf %74, %78 : vector<16x512xf32>
    %80 = vector.extract_strided_slice %28 {offsets = [1, 0], sizes = [15, 512], strides = [1, 1]} : vector<16x512xf32> to vector<15x512xf32>
    %cst_26 = arith.constant 0.000000e+00 : f32
    %81 = vector.broadcast %cst_26 : f32 to vector<1x512xf32>
    %82 = tpu.concatenate %80, %81 in 0 : vector<15x512xf32>, vector<1x512xf32> -> vector<16x512xf32>
    %c1_i32_27 = arith.constant 1 : i32
    %83 = vector.broadcast %c1_i32_27 : i32 to vector<16x1xi32>
    %84 = arith.addi %27, %83 : vector<16x1xi32>
    %c0_i32_28 = arith.constant 0 : i32
    %85 = vector.broadcast %c0_i32_28 : i32 to vector<16x1xi32>
    %86 = arith.cmpi sge, %84, %85 : vector<16x1xi32>
    %c1_i32_29 = arith.constant 1 : i32
    %87 = vector.broadcast %c1_i32_29 : i32 to vector<16x1xi32>
    %88 = arith.addi %27, %87 : vector<16x1xi32>
    %c8_i32_30 = arith.constant 8 : i32
    %89 = vector.broadcast %c8_i32_30 : i32 to vector<16x1xi32>
    %90 = arith.cmpi slt, %88, %89 : vector<16x1xi32>
    %91 = arith.andi %86, %90 : vector<16x1xi1>
    %cst_31 = arith.constant 0.000000e+00 : f32
    %92 = vector.shape_cast %91 : vector<16x1xi1> to vector<16x1xi1>
    %93 = vector.broadcast %92 : vector<16x1xi1> to vector<16x512xi1>
    %94 = vector.broadcast %cst_31 : f32 to vector<16x512xf32>
    %95 = arith.select %93, %82, %94 : vector<16x512xi1>, vector<16x512xf32>
    %96 = vector.shape_cast %31 : vector<1x512xi1> to vector<1x512xi1>
    %97 = vector.broadcast %96 : vector<1x512xi1> to vector<16x512xi1>
    %98 = arith.select %97, %28, %95 : vector<16x512xi1>, vector<16x512xf32>
    %c16_i32_32 = arith.constant 16 : i32
    %99 = tpu.dynamic_rotate %98 by %c16_i32_32 dim 1 : vector<16x512xf32>, i32 -> vector<16x512xf32>
    %c6 = arith.constant 6 : index
    %c0_33 = arith.constant 0 : index
    %100 = vector.load %arg4[%c6, %c0_33] : memref<9x512xf32, #tpu.memory_space<vmem>>, vector<1x512xf32>
    %101 = vector.broadcast %100 : vector<1x512xf32> to vector<16x512xf32>
    %102 = arith.mulf %99, %101 : vector<16x512xf32>
    %103 = arith.addf %79, %102 : vector<16x512xf32>
    %c7 = arith.constant 7 : index
    %c0_34 = arith.constant 0 : index
    %104 = vector.load %arg4[%c7, %c0_34] : memref<9x512xf32, #tpu.memory_space<vmem>>, vector<1x512xf32>
    %105 = vector.broadcast %104 : vector<1x512xf32> to vector<16x512xf32>
    %106 = arith.mulf %98, %105 : vector<16x512xf32>
    %107 = arith.addf %103, %106 : vector<16x512xf32>
    %c496_i32_35 = arith.constant 496 : i32
    %108 = tpu.dynamic_rotate %98 by %c496_i32_35 dim 1 : vector<16x512xf32>, i32 -> vector<16x512xf32>
    %c8 = arith.constant 8 : index
    %c0_36 = arith.constant 0 : index
    %109 = vector.load %arg4[%c8, %c0_36] : memref<9x512xf32, #tpu.memory_space<vmem>>, vector<1x512xf32>
    %110 = vector.broadcast %109 : vector<1x512xf32> to vector<16x512xf32>
    %111 = arith.mulf %108, %110 : vector<16x512xf32>
    %112 = arith.addf %107, %111 : vector<16x512xf32>
    %c0_37 = arith.constant 0 : index
    %c0_38 = arith.constant 0 : index
    %113 = vector.load %arg5[%c0_37, %c0_38] : memref<1x512xf32, #tpu.memory_space<vmem>>, vector<1x512xf32>
    %114 = vector.broadcast %113 : vector<1x512xf32> to vector<16x512xf32>
    %115 = arith.addf %112, %114 : vector<16x512xf32>
    %cst_39 = arith.constant 0.000000e+00 : f32
    %cst_40 = arith.constant 6.000000e+00 : f32
    %116 = vector.broadcast %cst_39 : f32 to vector<16x512xf32>
    %117 = arith.maximumf %116, %115 : vector<16x512xf32>
    %118 = vector.broadcast %cst_40 : f32 to vector<16x512xf32>
    %119 = arith.minimumf %118, %117 : vector<16x512xf32>
    %120 = arith.truncf %119 : vector<16x512xf32> to vector<16x512xbf16>
    %c0_41 = arith.constant 0 : index
    %c0_42 = arith.constant 0 : index
    %121 = vector.load %arg6[%c0_41, %c0_42] : memref<512x128xbf16, #tpu.memory_space<vmem>>, vector<512x128xbf16>
    %cst_43 = arith.constant dense<0.000000e+00> : vector<16x128xf32>
    %122 = tpu.matmul %120, %121, %cst_43 {dimension_numbers = #tpu.dot_dimension_numbers<[1], [0], [0], [1], [0, 0, 1, 1], [], []>} : vector<16x512xbf16>, vector<512x128xbf16>, vector<16x128xf32> -> vector<16x128xf32>
    %c0_44 = arith.constant 0 : index
    %c0_45 = arith.constant 0 : index
    %123 = vector.load %arg7[%c0_44, %c0_45] : memref<1x128xf32, #tpu.memory_space<vmem>>, vector<1x128xf32>
    %124 = vector.broadcast %123 : vector<1x128xf32> to vector<16x128xf32>
    %125 = arith.addf %122, %124 : vector<16x128xf32>
    %126 = arith.addf %125, %0 : vector<16x128xf32>
    %c0_46 = arith.constant 0 : index
    %c0_47 = arith.constant 0 : index
    %127 = vector.load %arg8[%c0_46, %c0_47] : memref<16x128xf32, #tpu.memory_space<vmem>>, vector<16x128xf32>
    tpu.vector_store %arg8[%c0_46, %c0_47], %126 {strides = array<i32>} : memref<16x128xf32, #tpu.memory_space<vmem>>, vector<16x128xf32>,
    return
  }
  func.func @transform_0(%arg0: i32) -> (i32, i32) {
    %c0_i32 = arith.constant 0 : i32
    %c0_i32_0 = arith.constant 0 : i32
    return %arg0, %c0_i32 : i32, i32
  }
  func.func @transform_1(%arg0: i32) -> (i32, i32) {
    %c0_i32 = arith.constant 0 : i32
    %c0_i32_0 = arith.constant 0 : i32
    %c0_i32_1 = arith.constant 0 : i32
    return %c0_i32, %c0_i32_0 : i32, i32
  }
  func.func @transform_2(%arg0: i32) -> (i32, i32) {
    %c0_i32 = arith.constant 0 : i32
    %c0_i32_0 = arith.constant 0 : i32
    %c0_i32_1 = arith.constant 0 : i32
    return %c0_i32, %c0_i32_0 : i32, i32
  }
  func.func @transform_3(%arg0: i32) -> (i32, i32) {
    %c0_i32 = arith.constant 0 : i32
    %c0_i32_0 = arith.constant 0 : i32
    %c0_i32_1 = arith.constant 0 : i32
    return %c0_i32, %c0_i32_0 : i32, i32
  }
  func.func @transform_4(%arg0: i32) -> (i32, i32) {
    %c0_i32 = arith.constant 0 : i32
    %c0_i32_0 = arith.constant 0 : i32
    %c0_i32_1 = arith.constant 0 : i32
    return %c0_i32, %c0_i32_0 : i32, i32
  }
  func.func @transform_5(%arg0: i32) -> (i32, i32) {
    %c0_i32 = arith.constant 0 : i32
    %c0_i32_0 = arith.constant 0 : i32
    %c0_i32_1 = arith.constant 0 : i32
    return %c0_i32, %c0_i32_0 : i32, i32
  }
  func.func @transform_6(%arg0: i32) -> (i32, i32) {
    %c0_i32 = arith.constant 0 : i32
    %c0_i32_0 = arith.constant 0 : i32
    %c0_i32_1 = arith.constant 0 : i32
    return %c0_i32, %c0_i32_0 : i32, i32
  }
  func.func @transform_7(%arg0: i32) -> (i32, i32) {
    %c0_i32 = arith.constant 0 : i32
    %c0_i32_0 = arith.constant 0 : i32
    return %arg0, %c0_i32 : i32, i32
  }
}

</mosaic_0001>

<bundles_post_ra>
// kernel: mbconv_forward.1
= control target key start
LH: loop header
LB: loop body
LE: loop exit
PB: predicated region body
PF: predicated region fallthrough
CT: control target
= control target key end

     0   :  { %v1605_v1 = vmov 0   ;;  %v64_v36 = vlaneseq  ;;  %vm782_vm0 = vcmask 1046528   ;;  %vm390_vm1 = vcmask 1040384   ;;  %s2571_s1 = inlined_call_operand.vmem [shape: bf16[128,512], index: 1, kind: input, shape index: {}]   ;;  %s2572_s0 = inlined_call_operand.vmem [shape: f32[16,128], index: 0, kind: input, shape index: {}, may-alias: {0,7}]   ;;  %s2573_s2 = inlined_call_operand.vmem [shape: f32[1,512], index: 2, kind: input, shape index: {}]   ;;  %s2574_s5 = inlined_call_operand.vmem [shape: bf16[512,128], index: 5, kind: input, shape index: {}]   ;;  %s2575_s3 = inlined_call_operand.vmem [shape: f32[9,512], index: 3, kind: input, shape index: {}]   ;;  %s2576_s4 = inlined_call_operand.vmem [shape: f32[1,512], index: 4, kind: input, shape index: {}]   ;;  %s2577_s6 = inlined_call_operand.vmem [shape: f32[1,128], index: 6, kind: input, shape index: {}]   ;;  %s2578_s7 = inlined_call_operand.vmem [shape: f32[16,128], index: 7, kind: output, shape index: {}, may-alias: {0,7}]  }
   0x1   :  { %v1523_v0 = vld [vmem:[%s2571_s1 + $0xe4] ss:$16 sps:$4 sm:$0xff]   ;;  %276 = vmatprep.mubr.bf16.mxu0 %v1605_v1  ;;  %319 = vmatprep.mubr.bf16.mxu1 %v1605_v1  ;;  %v1525_v2 = vld [vmem:[%s2571_s1 + $0xe0] ss:$16 sps:$4 sm:$0xff]   ;;  %v1529_v5 = vld [vmem:[%s2571_s1 + $0xec] ss:$16 sps:$4 sm:$0xff]  }
   0x2   :  { %244 = vmatprep.subr.bf16.mxu0 %v1523_v0  ;;  %v1526_v3 = vld [vmem:[%s2571_s1 + $0xc4] ss:$16 sps:$4 sm:$0xff]   ;;  %v1528_v4 = vld [vmem:[%s2571_s1 + $0xc0] ss:$16 sps:$4 sm:$0xff]   ;;  %v1531_v6 = vld [vmem:[%s2571_s1 + $0xe8] ss:$16 sps:$4 sm:$0xff]   ;;  %287 = vmatprep.subr.bf16.mxu1 %v1529_v5 }
   0x3   :  { %245 = vmatpush1.bf16.msra.mxu0 %v1525_v2  ;;  %v1532_v7 = vld [vmem:[%s2571_s1 + $0xa4] ss:$16 sps:$4 sm:$0xff]   ;;  %288 = vmatpush1.bf16.msra.mxu1 %v1531_v6  ;;  %v1535_v8 = vld [vmem:[%s2571_s1 + $0xcc] ss:$16 sps:$4 sm:$0xff]   ;;  %v1537_v9 = vld [vmem:[%s2571_s1 + $0xc8] ss:$16 sps:$4 sm:$0xff]  }
   0x4   :  { %246 = vmatprep.subr.bf16.mxu0 %v1526_v3  ;;  %v1534_v10 = vld [vmem:[%s2571_s1 + $0xa0] ss:$16 sps:$4 sm:$0xff]   ;;  %v1538_v11 = vld [vmem:[%s2571_s1 + $0x84] ss:$16 sps:$4 sm:$0xff]   ;;  %289 = vmatprep.subr.bf16.mxu1 %v1535_v8  ;;  %v1541_v12 = vld [vmem:[%s2571_s1 + $0xac] ss:$16 sps:$4 sm:$0xff]  }
   0x5   :  { %v1543_v13 = vld [vmem:[%s2571_s1 + $0xa8] ss:$16 sps:$4 sm:$0xff]   ;;  %v1540_v14 = vld [vmem:[%s2571_s1 + $0x80] ss:$16 sps:$4 sm:$0xff]   ;;  %v1547_v15 = vld [vmem:[%s2571_s1 + $0x8c] ss:$16 sps:$4 sm:$0xff]  }
   0x6   :  { %v1544_v16 = vld [vmem:[%s2571_s1 + $0x64] ss:$16 sps:$4 sm:$0xff]   ;;  %v1549_v17 = vld [vmem:[%s2571_s1 + $0x88] ss:$16 sps:$4 sm:$0xff]   ;;  %v1546_v18 = vld [vmem:[%s2571_s1 + $0x60] ss:$16 sps:$4 sm:$0xff]  }
   0x7   :  { %247 = vmatpush1.bf16.msra.mxu0 %v1528_v4  ;;  %290 = vmatpush1.bf16.msra.mxu1 %v1537_v9  ;;  %v1553_v19 = vld [vmem:[%s2571_s1 + $0x6c] ss:$16 sps:$4 sm:$0xff]   ;;  %v1550_v20 = vld [vmem:[%s2571_s1 + $0x44] ss:$16 sps:$4 sm:$0xff]   ;;  %v1555_v21 = vld [vmem:[%s2571_s1 + $0x68] ss:$16 sps:$4 sm:$0xff]  }
   0x8   :  { %248 = vmatprep.subr.bf16.mxu0 %v1532_v7  ;;  %291 = vmatprep.subr.bf16.mxu1 %v1541_v12  ;;  %v1552_v22 = vld [vmem:[%s2571_s1 + $0x40] ss:$16 sps:$4 sm:$0xff]   ;;  %v1559_v23 = vld [vmem:[%s2571_s1 + $0x4c] ss:$16 sps:$4 sm:$0xff]   ;;  %v1556_v24 = vld [vmem:[%s2571_s1 + $0x24] ss:$16 sps:$4 sm:$0xff]  }
   0x9   :  { %v1561_v25 = vld [vmem:[%s2571_s1 + $0x48] ss:$16 sps:$4 sm:$0xff]   ;;  %v1558_v26 = vld [vmem:[%s2571_s1 + $0x20] ss:$16 sps:$4 sm:$0xff]   ;;  %v1565_v27 = vld [vmem:[%s2571_s1 + $0x2c] ss:$16 sps:$4 sm:$0xff]  }
   0xa   :  { %v1562_v28 = vld [vmem:[%s2571_s1 + $0x4] ss:$16 sps:$4 sm:$0xff]   ;;  %v1564_v29 = vld [vmem:[%s2571_s1] ss:$16 sps:$4 sm:$0xff]   ;;  %v1567_v30 = vld [vmem:[%s2571_s1 + $0x28] ss:$16 sps:$4 sm:$0xff]  }
   0xb   :  { %249 = vmatpush1.bf16.msra.mxu0 %v1534_v10  ;;  %292 = vmatpush1.bf16.msra.mxu1 %v1543_v13  ;;  %v27_v31 = vld [vmem:[%s2572_s0] sm:$0xff]  ;;  %v28_v32 = vld [vmem:[%s2572_s0 + $0x8] sm:$0xff]  ;;  %v1751_v37 = vshrl.u32 %v64_v36, 7 }
   0xc   :  { %250 = vmatprep.subr.bf16.mxu0 %v1538_v11  ;;  %293 = vmatprep.subr.bf16.mxu1 %v1547_v15  ;;  %v1568_v33 = vld [vmem:[%s2571_s1 + $0xc] ss:$16 sps:$4 sm:$0xff]   ;;  %v29_v34 = vpack.c.bf16 %v28_v32, %v27_v31  ;;  %v1570_v35 = vld [vmem:[%s2571_s1 + $0x8] ss:$16 sps:$4 sm:$0xff]   ;;  %v62_v39 = vld [vmem:[%s2573_s2] sm:$0xf] }
   0xd   :  { %v1754_v38 = vsub.s32 0, %v1751_v37  ;;  %v1761_v43 = vsub.s32 2, %v1751_v37  ;;  %s1606_s1 = smov 16   ;;  %s1607_s2 = smov 112   ;;  %v1777_v59 = vsub.s32 3, %v1751_v37  ;;  %v1792_v0 = vsub.s32 1, %v1751_v37 }
   0xe   :  { %v353_v9 = vand.u32 7, %v1751_v37 }
   0xf   :  { %251 = vmatpush1.bf16.msra.mxu0 %v1540_v14  ;;  %294 = vmatpush1.bf16.msra.mxu1 %v1549_v17  ;;  %v67_v40 = vrot.slane %v62_v39, %v1754_v38  ;;  %v75_v46 = vrot.slane %v62_v39, %v1761_v43  ;;  %v79_v63 = vrot.slane %v62_v39, %v1777_v59 }
  0x10   :  { %252 = vmatprep.subr.bf16.mxu0 %v1544_v16  ;;  %295 = vmatprep.subr.bf16.mxu1 %v1553_v19  ;;  %v71_v3 = vrot.slane %v62_v39, %v1792_v0  ;;  %v415_v12 = vadd.s32 4294967295, %v353_v9  ;;  %v807_v32 = vadd.s32 1, %v353_v9  ;;  %v1588_v9 = vld [vmem:[%s2574_s5 + $0xa0] sm:$0xff]  }
  0x12   :  { %vm417_vm2 = vcmp.ge.s32.totalorder %v415_v12, 0  ;;  %vm811_vm5 = vcmp.lt.s32.totalorder %v807_v32, 8  ;;  %v1591_v12 = vld [vmem:[%s2574_s5 + $0x10] sm:$0xff]  }
  0x13   :  { %253 = vmatpush1.bf16.msra.mxu0 %v1546_v18  ;;  %296 = vmatpush1.bf16.msra.mxu1 %v1555_v21 }
  0x14   :  { %254 = vmatprep.subr.bf16.mxu0 %v1550_v20  ;;  %297 = vmatprep.subr.bf16.mxu1 %v1559_v23 }
  0x17   :  { %255 = vmatpush1.bf16.msra.mxu0 %v1552_v22  ;;  %298 = vmatpush1.bf16.msra.mxu1 %v1561_v25 }
  0x18   :  { %256 = vmatprep.subr.bf16.mxu0 %v1556_v24  ;;  %299 = vmatprep.subr.bf16.mxu1 %v1565_v27  ;;  %v348_v24 = vadd.s32 8, %v1751_v37  ;;  %v1572_v37 = vld [vmem:[%s2574_s5 + $0x38] sm:$0xff]  }
  0x1b   :  { %257 = vmatpush1.bf16.msra.mxu0 %v1558_v26  ;;  %300 = vmatpush1.bf16.msra.mxu1 %v1567_v30  ;;  %v360_v26 = vand.u32 7, %v348_v24  ;;  %v1599_v24 = vld [vmem:[%s2574_s5] sm:$0xff]  }
  0x1c   :  { %258 = vmatprep.subr.bf16.mxu0 %v1562_v28  ;;  %301 = vmatprep.subr.bf16.mxu1 %v1568_v33 }
  0x1d   :  { %v808_v30 = vadd.s32 1, %v360_v26 }
  0x1f   :  { %259 = vmatpush1.bf16.msra.mxu0 %v1564_v29  ;;  %302 = vmatpush1.bf16.msra.mxu1 %v1570_v35  ;;  %v416_v29 = vadd.s32 4294967295, %v360_v26  ;;  %vm812_vm4 = vcmp.lt.s32.totalorder %v808_v30, 8  ;;  %v1601_v26 = vld [vmem:[%s2574_s5 + $0xc0] sm:$0xff]  }
  0x21   :  { %vm418_vm3 = vcmp.ge.s32.totalorder %v416_v29, 0 }
  0x22   :  { %277 = vmatmul.mubr.bf16.vlgmr.msra.gmra.mxu0 %v29_v34  ;;  %320 = vmatmul.mubr.bf16.vlgmr.msra.gmra.mxu1 %v29_v34  ;;  %v1571_v34 = vld [vmem:[%s2574_s5 + $0x78] sm:$0xff]  }
  0x23   :  { %1476 = vmatprep.subr.bf16.mxu0 %v1571_v34 }
  0x24   :  { %1477 = vmatpush3.bf16.msra.mxu0 %v1572_v37 }
  0xe2   :  { %v278_v41 = vpop.f32.mrf.mxu0  ;;  %v321_v48 = vpop.f32.mrf.mxu1 }
  0xe3   :  { %v279_v42 = vadd.f32 %v278_v41, %v67_v40  ;;  %v322_v52 = vadd.f32 %v321_v48, %v75_v46  ;;  %v1577_v48 = vld [vmem:[%s2574_s5 + $0x68] sm:$0xff]  }
  0xe4   :  { %v280_v44 = vpop.f32.mrf.mxu0  ;;  %v323_v53 = vpop.f32.mrf.mxu1 }
  0xe5   :  { %v330_v45 = vmax.f32 %v279_v42, 0.0  ;;  %v332_v55 = vmax.f32 %v322_v52, 0.0  ;;  %v324_v2 = vadd.f32 %v323_v53, %v79_v63  ;;  %v281_v6 = vadd.f32 %v280_v44, %v71_v3  ;;  %v1573_v42 = vld [vmem:[%s2574_s5 + $0x70] sm:$0xff]   ;;  %v1574_v44 = vld [vmem:[%s2574_s5 + $0xf8] sm:$0xff]  }
  0xe6   :  { %v282_v47 = vpop.f32.mrf.mxu0  ;;  %v325_v58 = vpop.f32.mrf.mxu1  ;;  %1478 = vmatprep.subr.bf16.mxu0 %v1573_v42  ;;  %1498 = vmatprep.subr.bf16.mxu1 %v1574_v44 }
  0xe7   :  { %v1764_v49 = vmin.f32 %v330_v45, 6.0  ;;  %v283_v50 = vadd.f32 %v282_v47, %v67_v40  ;;  %v326_v60 = vadd.f32 %v325_v58, %v75_v46  ;;  %v1784_v62 = vmin.f32 %v332_v55, 6.0  ;;  %v1575_v46 = vld [vmem:[%s2574_s5 + $0x30] sm:$0xff]   ;;  %v1576_v47 = vld [vmem:[%s2574_s5 + $0xb8] sm:$0xff]   ;;  %v1579_v55 = vld [vmem:[%s2574_s5 + $0x28] sm:$0xff]  }
  0xe8   :  { %v333_v5 = vmax.f32 %v324_v2, 0.0  ;;  %v331_v8 = vmax.f32 %v281_v6, 0.0  ;;  %v284_v10 = vpop.f32.mrf.mxu0  ;;  %v327_v19 = vpop.f32.mrf.mxu1  ;;  %1479 = vmatpush3.bf16.msra.mxu0 %v1575_v46  ;;  %1499 = vmatpush3.bf16.msra.mxu1 %v1576_v47  ;;  %v1584_v2 = vld [vmem:[%s2574_s5 + $0xa8] sm:$0xff]   ;;  %v1587_v6 = vld [vmem:[%s2574_s5 + $0x18] sm:$0xff]  }
  0xe9   :  { %v334_v51 = vmax.f32 %v283_v50, 0.0  ;;  %459 = vrot.lane.b32.xlu0 %v1764_v49, %s1606_s1  ;;  %v789_v57 = vrot.slane %v1764_v49, 1  ;;  %v336_v1 = vmax.f32 %v326_v60, 0.0  ;;  %v285_v14 = vadd.f32 %v284_v10, %v71_v3  ;;  %v1578_v50 = vld [vmem:[%s2574_s5 + $0xf0] sm:$0xff]   ;;  %1480 = vmatprep.subr.bf16.mxu0 %v1577_v48  ;;  %v1585_v3 = vld [vmem:[%s2574_s5 + $0x58] sm:$0xff]  }
  0xea   :  { %v1805_v7 = vmin.f32 %v333_v5, 6.0  ;;  %v1817_v13 = vmin.f32 %v331_v8, 6.0  ;;  %v328_v20 = vadd.f32 %v327_v19, %v79_v63  ;;  %v391_v23 = vrot.slane %v1784_v62, 7  ;;  %1500 = vmatprep.subr.bf16.mxu1 %v1578_v50  ;;  %v1582_v63 = vld [vmem:[%s2574_s5 + $0xe8] sm:$0xff]   ;;  %v1586_v5 = vld [vmem:[%s2574_s5 + $0xe0] sm:$0xff]   ;;  %v1589_v10 = vld [vmem:[%s2574_s5 + $0x50] sm:$0xff]  }
  0xeb   :  { %v1768_v54 = vmin.f32 %v334_v51, 6.0  ;;  %v1799_v4 = vmin.f32 %v336_v1, 6.0  ;;  %v335_v16 = vmax.f32 %v285_v14, 0.0  ;;  %v1583_v1 = vld [vmem:[%s2574_s5 + $0x20] sm:$0xff]   ;;  %v1592_v14 = vld [vmem:[%s2574_s5 + $0x98] sm:$0xff]   ;;  %v1595_v19 = vld [vmem:[%s2574_s5 + $0x8] sm:$0xff]  }
  0xec   :  { %v392_v11 = vrot.slane %v1805_v7, 7  ;;  %v337_v21 = vmax.f32 %v328_v20, 0.0  ;;  %v411_v25 = vsel %vm390_vm1, 0.0, %v391_v23  ;;  %v792_v53 = vrot.slane %v1817_v13, 1  ;;  %1481 = vmatpush3.bf16.msra.mxu0 %v1579_v55  ;;  %v1596_v20 = vld [vmem:[%s2574_s5 + $0x90] sm:$0xff]  }
  0xed   :  { %461 = vrot.lane.b32.xlu1 %v1768_v54, %s1606_s1  ;;  %561 = vrot.lane.b32.xlu0 %v1764_v49, %s1607_s2  ;;  %v790_v56 = vrot.slane %v1768_v54, 1  ;;  %v1831_v18 = vmin.f32 %v335_v16, 6.0  ;;  %v1863_v27 = vsel %vm417_vm2, %v411_v25, 0.0  ;;  %v395_v28 = vrot.slane %v1799_v4, 7  ;;  %v1594_v16 = vld [vmem:[%s2574_s5 + $0xd0] sm:$0xff]   ;;  %v1600_v25 = vld [vmem:[%s2574_s5 + $0x88] sm:$0xff]  }
  0xee   :  { %v412_v15 = vsel %vm390_vm1, 0.0, %v392_v11  ;;  %v1845_v22 = vmin.f32 %v337_v21, 6.0  ;;  %v1597_v21 = vld [vmem:[%s2574_s5 + $0x40] sm:$0xff]  }
  0xef   :  { %v1782_v61 = vsel %vm782_vm0, %v789_v57, %v790_v56  ;;  %v1825_v17 = vsel %vm417_vm2, %v412_v15, 0.0  ;;  %v396_v31 = vsel %vm390_vm1, %v391_v23, %v395_v28  ;;  %v805_v33 = vsel %vm782_vm0, %v790_v56, 0.0  ;;  %v1580_v56 = vld [vmem:[%s2574_s5 + $0xb0] sm:$0xff]   ;;  %v1593_v15 = vld [vmem:[%s2574_s5 + $0x48] sm:$0xff]   ;;  %v1602_v28 = vld [vmem:[%s2574_s5 + $0x80] sm:$0xff]  }
  0xf0   :  { %v1882_v35 = vsel %vm418_vm3, %v396_v31, 0.0  ;;  %v1892_v39 = vsel %vm812_vm4, %v805_v33, 0.0  ;;  %v397_v40 = vrot.slane %v1845_v22, 7  ;;  %v793_v45 = vrot.slane %v1831_v18, 1  ;;  %1501 = vmatpush3.bf16.msra.mxu1 %v1580_v56  ;;  %v1598_v23 = vld [vmem:[%s2574_s5 + $0xc8] sm:$0xff]  }
  0xf1   :  { %563 = vrot.lane.b32.xlu1 %v1768_v54, %s1607_s2  ;;  %617 = vrot.lane.b32.xlu0 %v1764_v49, %s1606_s1  ;;  %v1924_v52 = vsel %vm811_vm5, %v1782_v61, 0.0  ;;  %v1581_v61 = vld [vmem:[%s2574_s5 + $0x60] sm:$0xff]  }
  0xf2   :  { %v398_v41 = vsel %vm390_vm1, %v392_v11, %v397_v40  ;;  %v794_v57 = vsel %vm782_vm0, %v792_v53, %v793_v45  ;;  %v806_v60 = vsel %vm782_vm0, %v793_v45, 0.0  ;;  %1482 = vmatprep.subr.bf16.mxu0 %v1581_v61  ;;  %1502 = vmatprep.subr.bf16.mxu1 %v1582_v63  ;;  %v1590_v11 = vld [vmem:[%s2574_s5 + $0xd8] sm:$0xff]   ;;  %v2050_v45 = vand.u32 127, %v64_v36 }
  0xf3   :  { %v1920_v51 = vsel %vm418_vm3, %v398_v41, 0.0  ;;  %v1943_v58 = vsel %vm811_vm5, %v794_v57, 0.0  ;;  %v1972_v8 = vsel %vm812_vm4, %v806_v60, 0.0  ;;  %1483 = vmatpush3.bf16.msra.mxu0 %v1583_v1  ;;  %v2055_v46 = vld [vmem:[%s2575_s3] ss:$8 sm:$0xf] }
  0xf4   :  { %1503 = vmatpush3.bf16.msra.mxu1 %v1584_v2  ;;  %1484 = vmatprep.subr.bf16.mxu0 %v1585_v3  ;;  %v1435_v50 = vld [vmem:[%s2575_s3 + $0x1] ss:$8 sm:$0xf]  ;;  %vm467_vm6 = vcmp.lt.s32.totalorder %v2050_v45, 16  ;;  %v2067_v53 = vrot.slane %v2055_v46, %v1777_v59  ;;  %vm569_vm7 = vcmp.lt.s32.totalorder %v2050_v45, 112  ;;  %v2090_v1 = vrot.slane %v2055_v46, %v1761_v43 }
  0xf5   :  { %619 = vrot.lane.b32.xlu1 %v1768_v54, %s1606_s1  ;;  %625 = vrot.lane.b32.xlu0 %v1784_v62, %s1606_s1  ;;  %v2070_v36 = vrot.slane %v1435_v50, %v1777_v59  ;;  %v2083_v60 = vld [vmem:[%s2575_s3 + $0x2] ss:$8 sm:$0xf]  ;;  %v528_v2 = vrot.slane %v1435_v50, %v1761_v43  ;;  %v2096_v3 = vld [vmem:[%s2575_s3 + $0x3] ss:$8 sm:$0xf] }
  0xf6   :  { %1504 = vmatprep.subr.bf16.mxu1 %v1586_v5  ;;  %2611 = vst [vmem:[#allocation10_spill] sm:$0xff] %v2090_v1 }
  0xf7   :  { %1485 = vmatpush3.bf16.msra.mxu0 %v1587_v6  ;;  %v540_v61 = vmul.f32 %v2070_v36, %v1817_v13 }
  0xf8   :  { %1505 = vmatpush3.bf16.msra.mxu1 %v1588_v9  ;;  %1486 = vmatprep.subr.bf16.mxu0 %v1589_v10  ;;  %v2104_v9 = vrot.slane %v2083_v60, %v1761_v43 }
  0xf9   :  { %627 = vrot.lane.b32.xlu1 %v1799_v4, %s1606_s1  ;;  %727 = vrot.lane.b32.xlu0 %v1784_v62, %s1607_s2 }
  0xfa   :  { %1506 = vmatprep.subr.bf16.mxu1 %v1590_v11 }
  0xfb   :  { %1487 = vmatpush3.bf16.msra.mxu0 %v1591_v12 }
  0xfc   :  { %1507 = vmatpush3.bf16.msra.mxu1 %v1592_v14  ;;  %1488 = vmatprep.subr.bf16.mxu0 %v1593_v15  ;;  %v539_v15 = vmul.f32 %v528_v2, %v1764_v49 }
  0xfd   :  { %729 = vrot.lane.b32.xlu1 %v1799_v4, %s1607_s2  ;;  %719 = vrot.lane.b32.xlu0 %v1764_v49, %s1607_s2 }
  0xfe   :  { %1508 = vmatprep.subr.bf16.mxu1 %v1594_v16  ;;  %v2119_v16 = vrot.slane %v2096_v3, %v1761_v43 }
  0xff   :  { %1489 = vmatpush3.bf16.msra.mxu0 %v1595_v19 }
 0x100   :  { %1509 = vmatpush3.bf16.msra.mxu1 %v1596_v20  ;;  %1490 = vmatprep.subr.bf16.mxu0 %v1597_v21  ;;  %2613 = vst [vmem:[#allocation12_spill] sm:$0xff] %v2119_v16 }
 0x101   :  { %721 = vrot.lane.b32.xlu1 %v1768_v54, %s1607_s2  ;;  %835 = vrot.lane.b32.xlu0 %v1784_v62, %s1606_s1 }
 0x102   :  { %1510 = vmatprep.subr.bf16.mxu1 %v1598_v23 }
 0x103   :  { %1491 = vmatpush3.bf16.msra.mxu0 %v1599_v24 }
 0x104   :  { %1511 = vmatpush3.bf16.msra.mxu1 %v1600_v25 }
 0x105   :  { %837 = vrot.lane.b32.xlu1 %v1799_v4, %s1606_s1  ;;  %463 = vrot.lane.b32.xlu0 %v1817_v13, %s1606_s1 }
 0x106   :  { %1512 = vmatprep.subr.bf16.mxu1 %v1601_v26 }
 0x108   :  { %1513 = vmatpush3.bf16.msra.mxu1 %v1602_v28 }
 0x109   :  { %455 = vrot.lane.b32.xlu1 %v1825_v17, %s1606_s1  ;;  %565 = vrot.lane.b32.xlu0 %v1817_v13, %s1607_s2 }
 0x10d   :  { %465 = vrot.lane.b32.xlu1 %v1831_v18, %s1606_s1  ;;  %621 = vrot.lane.b32.xlu0 %v1817_v13, %s1606_s1 }
 0x111   :  { %567 = vrot.lane.b32.xlu1 %v1831_v18, %s1607_s2  ;;  %629 = vrot.lane.b32.xlu0 %v1805_v7, %s1606_s1 }
 0x115   :  { %623 = vrot.lane.b32.xlu1 %v1831_v18, %s1606_s1  ;;  %723 = vrot.lane.b32.xlu0 %v1817_v13, %s1607_s2 }
 0x119   :  { %631 = vrot.lane.b32.xlu1 %v1845_v22, %s1606_s1  ;;  %731 = vrot.lane.b32.xlu0 %v1805_v7, %s1607_s2 }
 0x11d   :  { %725 = vrot.lane.b32.xlu1 %v1831_v18, %s1607_s2  ;;  %839 = vrot.lane.b32.xlu0 %v1805_v7, %s1606_s1 }
 0x121   :  { %733 = vrot.lane.b32.xlu1 %v1845_v22, %s1607_s2  ;;  %941 = vrot.lane.b32.xlu0 %v1805_v7, %s1607_s2 }
 0x125   :  { %841 = vrot.lane.b32.xlu1 %v1845_v22, %s1606_s1  ;;  %451 = vrot.lane.b32.xlu0 %v1863_v27, %s1606_s1 }
 0x129   :  { %943 = vrot.lane.b32.xlu1 %v1845_v22, %s1607_s2  ;;  %553 = vrot.lane.b32.xlu0 %v1863_v27, %s1607_s2 }
 0x12d   :  { %555 = vrot.lane.b32.xlu1 %v1882_v35, %s1607_s2  ;;  %557 = vrot.lane.b32.xlu0 %v1825_v17, %s1607_s2 }
 0x131   :  { %845 = vrot.lane.b32.xlu1 %v1892_v39, %s1606_s1  ;;  %453 = vrot.lane.b32.xlu0 %v1882_v35, %s1606_s1 }
 0x135   :  { %457 = vrot.lane.b32.xlu1 %v1920_v51, %s1606_s1  ;;  %843 = vrot.lane.b32.xlu0 %v1924_v52, %s1606_s1 }
 0x139   :  { %559 = vrot.lane.b32.xlu1 %v1920_v51, %s1607_s2  ;;  %945 = vrot.lane.b32.xlu0 %v1924_v52, %s1607_s2 }
 0x13d   :  { %947 = vrot.lane.b32.xlu1 %v1892_v39, %s1607_s2  ;;  %847 = vrot.lane.b32.xlu0 %v1943_v58, %s1606_s1 }
 0x141   :  { %849 = vrot.lane.b32.xlu1 %v1972_v8, %s1606_s1  ;;  %937 = vrot.lane.b32.xlu0 %v1784_v62, %s1607_s2 }
 0x145   :  { %939 = vrot.lane.b32.xlu1 %v1799_v4, %s1607_s2  ;;  %949 = vrot.lane.b32.xlu0 %v1943_v58, %s1607_s2 }
 0x149   :  { %951 = vrot.lane.b32.xlu1 %v1972_v8, %s1607_s2 }
 0x15b   :  { %v460_v29 = vpop.permute.xlu0 %459 }
 0x15f   :  { %v2029_v30 = vpop.permute.xlu1 %461  ;;  %v2031_v31 = vpop.permute.xlu0 %561 }
 0x160   :  { %2603 = vst [vmem:[#allocation2_spill] sm:$0xff] %v2031_v31 }
 0x163   :  { %v2033_v32 = vpop.permute.xlu1 %563  ;;  %v2035_v33 = vpop.permute.xlu0 %617 }
 0x167   :  { %v2037_v34 = vpop.permute.xlu1 %619  ;;  %v2039_v37 = vpop.permute.xlu0 %625 }
 0x168   :  { %2604 = vst [vmem:[#allocation3_spill] sm:$0xff] %v2037_v34 }
 0x16b   :  { %v2041_v40 = vpop.permute.xlu1 %627  ;;  %v2043_v41 = vpop.permute.xlu0 %727 }
 0x16c   :  { %2605 = vst [vmem:[#allocation4_spill] sm:$0xff] %v2043_v41 }
 0x16f   :  { %v2045_v42 = vpop.permute.xlu1 %729  ;;  %v2047_v44 = vpop.permute.xlu0 %719 }
 0x170   :  { %2606 = vst [vmem:[#allocation5_spill] sm:$0xff] %v2045_v42  ;;  %2607 = vst [vmem:[#allocation6_spill] sm:$0xff] %v2047_v44 }
 0x173   :  { %v2057_v47 = vpop.permute.xlu1 %721  ;;  %v2059_v48 = vpop.permute.xlu0 %835 }
 0x174   :  { %2608 = vst [vmem:[#allocation7_spill] sm:$0xff] %v2057_v47  ;;  %2609 = vst [vmem:[#allocation8_spill] sm:$0xff] %v2059_v48 }
 0x177   :  { %v2072_v55 = vpop.permute.xlu1 %837  ;;  %v2074_v56 = vpop.permute.xlu0 %463 }
 0x178   :  { %2610 = vst [vmem:[#allocation9_spill] sm:$0xff] %v2072_v55  ;;  %v468_v57 = vsel %vm467_vm6, %v460_v29, %v2074_v56 }
 0x179   :  { %v501_v63 = vmul.f32 %v2067_v53, %v468_v57 }
 0x17b   :  { %v2098_v5 = vadd.f32 %v540_v61, %v501_v63  ;;  %v2100_v6 = vpop.permute.xlu1 %455  ;;  %v2106_v10 = vpop.permute.xlu0 %565  ;;  %v1438_v61 = vld [vmem:[%s2575_s3 + $0x4] ss:$8 sm:$0xf] }
 0x17c   :  { %v470_v11 = vsel %vm467_vm6, %v2100_v6, %v460_v29  ;;  %v570_v12 = vsel %vm569_vm7, %v2031_v31, %v2106_v10 }
 0x17d   :  { %2612 = vst [vmem:[#allocation11_spill] sm:$0xff] %v2098_v5  ;;  %v500_v14 = vmul.f32 %v2090_v1, %v470_v11  ;;  %v603_v20 = vmul.f32 %v2104_v9, %v570_v12  ;;  %v694_v12 = vrot.slane %v1438_v61, %v1761_v43 }
 0x17f   :  { %v547_v19 = vadd.f32 %v539_v15, %v500_v14  ;;  %v2122_v21 = vpop.permute.xlu1 %465  ;;  %v2124_v23 = vpop.permute.xlu0 %621  ;;  %v1441_v14 = vld [vmem:[%s2575_s3 + $0x7] ss:$8 sm:$0xf]  ;;  %v1439_v15 = vld [vmem:[%s2575_s3 + $0x5] ss:$8 sm:$0xf]  ;;  %v705_v1 = vmul.f32 %v694_v12, %v1784_v62 }
 0x180   :  { %v635_v24 = vsel %vm467_vm6, %v2124_v23, %v2039_v37  ;;  %v916_v42 = vrot.slane %v1441_v14, %v1777_v59  ;;  %v908_v5 = vrot.slane %v1441_v14, %v1792_v0 }
 0x181   :  { %v611_v25 = vadd.f32 %v603_v20, %v547_v19  ;;  %v666_v26 = vmul.f32 %v2119_v16, %v635_v24  ;;  %v2150_v19 = vrot.slane %v1439_v15, %v1761_v43  ;;  %v524_v20 = vrot.slane %v1435_v50, %v1792_v0 }
 0x182   :  { %v520_v24 = vrot.slane %v1435_v50, %v1754_v38  ;;  %v686_v16 = vrot.slane %v1438_v61, %v1754_v38 }
 0x183   :  { %v674_v28 = vadd.f32 %v666_v26, %v611_v25  ;;  %v2131_v29 = vpop.permute.xlu1 %567  ;;  %v2133_v57 = vpop.permute.xlu0 %629  ;;  %v690_v25 = vrot.slane %v1438_v61, %v1792_v0  ;;  %v912_v26 = vrot.slane %v1441_v14, %v1761_v43  ;;  %v2171_v44 = vmul.f32 %v524_v20, %v1825_v17 }
 0x185   :  { %v713_v50 = vadd.f32 %v705_v1, %v674_v28  ;;  %v2177_v34 = vmul.f32 %v690_v25, %v1817_v13  ;;  %v2187_v1 = vmul.f32 %v912_v26, %v1924_v52  ;;  %v2196_v13 = vmul.f32 %v916_v42, %v1943_v58 }
 0x186   :  { %v2207_v52 = vmul.f32 %v524_v20, %v1920_v51  ;;  %v2216_v58 = vmul.f32 %v908_v5, %v1805_v7  ;;  %v2228_v51 = vmul.f32 %v686_v16, %v1764_v49 }
 0x187   :  { %v2138_v63 = vpop.permute.xlu1 %623  ;;  %v2140_v11 = vpop.permute.xlu0 %723  ;;  %2618 = vst [vmem:[#allocation17_spill] sm:$0xff] %v2187_v1  ;;  %2620 = vst [vmem:[#allocation19_spill] sm:$0xff] %v2196_v13 }
 0x188   :  { %2614 = vst [vmem:[#allocation13_spill] sm:$0xff] %v2140_v11  ;;  %v2174_v11 = vmul.f32 %v520_v24, %v1863_v27 }
 0x18b   :  { %v2156_v55 = vpop.permute.xlu1 %631  ;;  %v2159_v48 = vpop.permute.xlu0 %731 }
 0x18c   :  { %2615 = vst [vmem:[#allocation14_spill] sm:$0xff] %v2156_v55  ;;  %2616 = vst [vmem:[#allocation15_spill] sm:$0xff] %v2159_v48  ;;  %v735_v47 = vsel %vm569_vm7, %v2043_v41, %v2159_v48  ;;  %v698_v55 = vrot.slane %v1438_v61, %v1777_v59  ;;  %v904_v48 = vrot.slane %v1441_v14, %v1754_v38 }
 0x18d   :  { %v768_v31 = vmul.f32 %v2150_v19, %v735_v47  ;;  %v2181_v41 = vmul.f32 %v520_v24, %v1882_v35  ;;  %v2184_v47 = vmul.f32 %v912_v26, %v1892_v39  ;;  %v2199_v61 = vmul.f32 %v916_v42, %v1972_v8  ;;  %v1440_v8 = vld [vmem:[%s2575_s3 + $0x6] ss:$8 sm:$0xf] }
 0x18e   :  { %v544_v35 = vmul.f32 %v2070_v36, %v1831_v18  ;;  %v2204_v39 = vmul.f32 %v694_v12, %v1799_v4  ;;  %v2213_v14 = vmul.f32 %v690_v25, %v1831_v18  ;;  %v2222_v42 = vmul.f32 %v908_v5, %v1845_v22 }
 0x18f   :  { %2617 = vst [vmem:[#allocation16_spill] sm:$0xff] %v2184_v47  ;;  %v2189_v28 = vadd.f32 %v768_v31, %v713_v50  ;;  %v2191_v17 = vpop.permute.xlu1 %725  ;;  %v2193_v27 = vpop.permute.xlu0 %839  ;;  %2621 = vst [vmem:[#allocation20_spill] sm:$0xff] %v2199_v61  ;;  %v2210_v31 = vmul.f32 %v528_v2, %v1768_v54  ;;  %v2225_v36 = vmul.f32 %v698_v55, %v1805_v7 }
 0x190   :  { %2622 = vst [vmem:[#allocation21_spill] sm:$0xff] %v2204_v39  ;;  %2623 = vst [vmem:[#allocation22_spill] sm:$0xff] %v2213_v14  ;;  %v2231_v2 = vmul.f32 %v698_v55, %v1845_v22  ;;  %v2235_v18 = vrot.slane %v2096_v3, %v1792_v0  ;;  %v2242_v5 = vmul.f32 %v686_v16, %v1768_v54  ;;  %v2646_v39 = vld [vmem:[#allocation2_spill] sm:$0xff] }
 0x191   :  { %2619 = vst [vmem:[#allocation18_spill] sm:$0xff] %v2189_v28  ;;  %2624 = vst [vmem:[#allocation23_spill] sm:$0xff] %v2222_v42  ;;  %v2245_v7 = vmul.f32 %v904_v48, %v1784_v62  ;;  %v2248_v49 = vmul.f32 %v904_v48, %v1799_v4  ;;  %v2252_v22 = vrot.slane %v2096_v3, %v1754_v38  ;;  %v1442_v62 = vld [vmem:[%s2575_s3 + $0x20] ss:$8 sm:$0xf] }
 0x192   :  { %2625 = vst [vmem:[#allocation24_spill] sm:$0xff] %v2242_v5  ;;  %v2256_v55 = vrot.slane %v2096_v3, %v1777_v59  ;;  %v2259_v24 = vrot.slane %v1439_v15, %v1754_v38  ;;  %v2262_v54 = vrot.slane %v1439_v15, %v1792_v0  ;;  %v1000_v4 = vld [vmem:[%s2576_s4] sm:$0xf]  ;;  %v469_v48 = vsel %vm467_vm6, %v2029_v30, %v2122_v21 }
 0x193   :  { %v2237_v12 = vpop.permute.xlu1 %733  ;;  %v2239_v20 = vpop.permute.xlu0 %941  ;;  %2626 = vst [vmem:[#allocation25_spill] sm:$0xff] %v2245_v7  ;;  %2627 = vst [vmem:[#allocation26_spill] sm:$0xff] %v2248_v49  ;;  %v2275_v3 = vrot.slane %v1439_v15, %v1777_v59  ;;  %v2278_v16 = vrot.slane %v1440_v8, %v1792_v0  ;;  %v2282_v25 = vrot.slane %v2055_v46, %v1754_v38 }
 0x194   :  { %v2286_v26 = vrot.slane %v2055_v46, %v1792_v0  ;;  %v596_v50 = vrot.slane %v2083_v60, %v1777_v59  ;;  %v2292_v61 = vrot.slane %v2083_v60, %v1754_v38  ;;  %v2296_v15 = vrot.slane %v2083_v60, %v1792_v0 }
 0x195   :  { %v2301_v42 = vrot.slane %v1440_v8, %v1761_v43  ;;  %v2304_v46 = vrot.slane %v1442_v62, %v1792_v0  ;;  %v2307_v13 = vrot.slane %v1000_v4, %v1792_v0  ;;  %v2310_v7 = vrot.slane %v1440_v8, %v1754_v38 }
 0x196   :  { %v505_v5 = vmul.f32 %v2067_v53, %v469_v48  ;;  %v637_v60 = vsel %vm467_vm6, %v2035_v33, %v2124_v23  ;;  %v2321_v1 = vrot.slane %v1440_v8, %v1777_v59  ;;  %v571_v0 = vsel %vm569_vm7, %v2033_v32, %v2131_v29 }
 0x197   :  { %v2298_v47 = vpop.permute.xlu1 %841  ;;  %v452_v49 = vpop.permute.xlu0 %451  ;;  %2628 = vst [vmem:[#allocation27_spill] sm:$0xff] %v2304_v46  ;;  %2629 = vst [vmem:[#allocation28_spill] sm:$0xff] %v2307_v13  ;;  %v2331_v48 = vrot.slane %v1442_v62, %v1754_v38  ;;  %v2334_v23 = vrot.slane %v1000_v4, %v1754_v38  ;;  %v639_v8 = vsel %vm467_vm6, %v2133_v57, %v2035_v33 }
 0x198   :  { %2630 = vst [vmem:[#allocation29_spill] sm:$0xff] %v2310_v7  ;;  %v474_v14 = vsel %vm467_vm6, %v2074_v56, %v452_v49  ;;  %2631 = vst [vmem:[#allocation30_spill] sm:$0xff] %v2321_v1  ;;  %v472_v53 = vsel %vm467_vm6, %v452_v49, %v2100_v6  ;;  %v633_v56 = vsel %vm467_vm6, %v2039_v37, %v2133_v57 }
 0x199   :  { %2632 = vst [vmem:[#allocation31_spill] sm:$0xff] %v2331_v48  ;;  %2633 = vst [vmem:[#allocation32_spill] sm:$0xff] %v2334_v23  ;;  %v2345_v13 = vrot.slane %v1442_v62, %v1761_v43  ;;  %v2348_v6 = vrot.slane %v1442_v62, %v1777_v59  ;;  %v665_v49 = vmul.f32 %v2235_v18, %v637_v60 }
 0x19a   :  { %v498_v38 = vmul.f32 %v2282_v25, %v474_v14  ;;  %v2355_v37 = vrot.slane %v1000_v4, %v1761_v43  ;;  %v2358_v1 = vrot.slane %v1000_v4, %v1777_v59  ;;  %v552_v33 = vadd.f32 %v544_v35, %v505_v5  ;;  %v2639_v35 = vld [vmem:[#allocation3_spill] sm:$0xff]  ;;  %v2640_v5 = vld [vmem:[#allocation4_spill] sm:$0xff]  ;;  %v2641_v4 = vld [vmem:[#allocation13_spill] sm:$0xff] }
 0x19b   :  { %2634 = vst [vmem:[#allocation33_spill] sm:$0xff] %v2345_v13  ;;  %2635 = vst [vmem:[#allocation34_spill] sm:$0xff] %v2348_v6  ;;  %v2352_v23 = vpop.permute.xlu1 %943  ;;  %v554_v48 = vpop.permute.xlu0 %553  ;;  %v2361_v57 = vmul.f32 %v2104_v9, %v571_v0  ;;  %v499_v62 = vmul.f32 %v2286_v26, %v472_v53  ;;  %v664_v14 = vmul.f32 %v2252_v22, %v639_v8  ;;  %v2642_v0 = vld [vmem:[#allocation6_spill] sm:$0xff] }
 0x19c   :  { %2636 = vst [vmem:[#allocation35_spill] sm:$0xff] %v2352_v23  ;;  %2637 = vst [vmem:[#allocation36_spill] sm:$0xff] %v2355_v37  ;;  %v576_v60 = vsel %vm569_vm7, %v2106_v10, %v554_v48  ;;  %v667_v6 = vmul.f32 %v2256_v55, %v633_v56  ;;  %v636_v43 = vsel %vm467_vm6, %v2138_v63, %v2041_v40  ;;  %v2643_v56 = vld [vmem:[#allocation14_spill] sm:$0xff]  ;;  %v2645_v37 = vld [vmem:[#allocation11_spill] sm:$0xff] }
 0x19d   :  { %2638 = vst [vmem:[#allocation37_spill] sm:$0xff] %v2358_v1  ;;  %v604_v59 = vmul.f32 %v596_v50, %v576_v60  ;;  %v638_v9 = vsel %vm467_vm6, %v2639_v35, %v2138_v63  ;;  %v737_v10 = vsel %vm569_vm7, %v2641_v4, %v2640_v5  ;;  %v739_v53 = vsel %vm569_vm7, %v2642_v0, %v2641_v4  ;;  %v2644_v60 = vld [vmem:[#allocation15_spill] sm:$0xff] }
 0x19e   :  { %v634_v8 = vsel %vm467_vm6, %v2041_v40, %v2643_v56  ;;  %v640_v63 = vsel %vm467_vm6, %v2643_v56, %v2639_v35  ;;  %v741_v5 = vsel %vm569_vm7, %v2644_v60, %v2642_v0  ;;  %v545_v1 = vadd.f32 %v2174_v11, %v498_v38 }
 0x19f   :  { %v612_v13 = vadd.f32 %v604_v59, %v2645_v37  ;;  %v556_v4 = vpop.permute.xlu1 %555  ;;  %v558_v7 = vpop.permute.xlu0 %557  ;;  %v546_v23 = vadd.f32 %v2171_v44, %v499_v62  ;;  %v2411_v37 = vmul.f32 %v2235_v18, %v638_v9  ;;  %v2647_v44 = vld [vmem:[#allocation12_spill] sm:$0xff]  ;;  %v671_v59 = vmul.f32 %v2256_v55, %v634_v8  ;;  %v2648_v9 = vld [vmem:[#allocation7_spill] sm:$0xff] }
 0x1a0   :  { %v577_v40 = vsel %vm569_vm7, %v2131_v29, %v556_v4  ;;  %v572_v35 = vsel %vm569_vm7, %v558_v7, %v2646_v39  ;;  %v574_v56 = vsel %vm569_vm7, %v554_v48, %v558_v7  ;;  %v670_v62 = vmul.f32 %v2647_v44, %v636_v43 }
 0x1a1   :  { %v675_v0 = vadd.f32 %v667_v6, %v612_v13  ;;  %v608_v60 = vmul.f32 %v596_v50, %v577_v40  ;;  %v601_v11 = vmul.f32 %v2292_v61, %v574_v56  ;;  %v602_v38 = vmul.f32 %v2296_v15, %v572_v35 }
 0x1a2   :  { %v2415_v29 = vmul.f32 %v2259_v24, %v739_v53  ;;  %v767_v48 = vmul.f32 %v2262_v54, %v737_v10  ;;  %v668_v18 = vmul.f32 %v2252_v22, %v640_v63  ;;  %v769_v6 = vmul.f32 %v2275_v3, %v741_v5  ;;  %v2649_v53 = vld [vmem:[#allocation5_spill] sm:$0xff] }
 0x1a3   :  { %v616_v39 = vadd.f32 %v608_v60, %v552_v33  ;;  %v609_v46 = vadd.f32 %v601_v11, %v545_v1  ;;  %v610_v28 = vadd.f32 %v602_v38, %v546_v23  ;;  %v2418_v7 = vpop.permute.xlu1 %845  ;;  %v454_v13 = vpop.permute.xlu0 %453  ;;  %v714_v50 = vadd.f32 %v2225_v36, %v675_v0 }
 0x1a4   :  { %v475_v43 = vsel %vm467_vm6, %v2122_v21, %v454_v13  ;;  %v742_v1 = vsel %vm569_vm7, %v2237_v12, %v2648_v9  ;;  %v738_v36 = vsel %vm569_vm7, %v2191_v17, %v2649_v53  ;;  %v740_v22 = vsel %vm569_vm7, %v2648_v9, %v2191_v17  ;;  %v2650_v21 = vld [vmem:[#allocation8_spill] sm:$0xff] }
 0x1a5   :  { %v679_v55 = vadd.f32 %v671_v59, %v616_v39  ;;  %v672_v23 = vadd.f32 %v664_v14, %v609_v46  ;;  %v673_v33 = vadd.f32 %v665_v49, %v610_v28  ;;  %v855_v10 = vsel %vm467_vm6, %v2650_v21, %v2193_v27 }
 0x1a6   :  { %v777_v8 = vadd.f32 %v769_v6, %v714_v50  ;;  %v502_v28 = vmul.f32 %v2282_v25, %v475_v43  ;;  %v773_v40 = vmul.f32 %v2275_v3, %v742_v1  ;;  %v883_v25 = vmul.f32 %v2278_v16, %v855_v10  ;;  %v2653_v1 = vld [vmem:[#allocation18_spill] sm:$0xff] }
 0x1a7   :  { %v712_v63 = vadd.f32 %v2177_v34, %v673_v33  ;;  %v458_v46 = vpop.permute.xlu1 %457  ;;  %v844_v49 = vpop.permute.xlu0 %843  ;;  %v711_v14 = vadd.f32 %v2228_v51, %v672_v23  ;;  %v718_v5 = vadd.f32 %v2231_v2, %v679_v55  ;;  %v2651_v51 = vld [vmem:[#allocation10_spill] sm:$0xff]  ;;  %v736_v3 = vsel %vm569_vm7, %v2649_v53, %v2237_v12  ;;  %v2654_v53 = vld [vmem:[#allocation27_spill] sm:$0xff] }
 0x1a8   :  { %v471_v17 = vsel %vm467_vm6, %v458_v46, %v2029_v30  ;;  %v473_v35 = vsel %vm467_vm6, %v454_v13, %v458_v46  ;;  %v853_v34 = vsel %vm467_vm6, %v2193_v27, %v844_v49  ;;  %v2652_v30 = vld [vmem:[#allocation9_spill] sm:$0xff]  ;;  %v549_v38 = vadd.f32 %v2181_v41, %v502_v28  ;;  %v2656_v28 = vld [vmem:[#allocation35_spill] sm:$0xff] }
 0x1a9   :  { %v503_v56 = vmul.f32 %v2286_v26, %v473_v35  ;;  %v504_v0 = vmul.f32 %v2651_v51, %v471_v17  ;;  %v775_v2 = vadd.f32 %v767_v48, %v712_v63  ;;  %v856_v60 = vsel %vm467_vm6, %v2652_v30, %v2298_v47  ;;  %v2657_v46 = vld [vmem:[#allocation29_spill] sm:$0xff]  ;;  %v2660_v35 = vld [vmem:[#allocation22_spill] sm:$0xff] }
 0x1aa   :  { %v884_v11 = vmul.f32 %v2301_v42, %v853_v34  ;;  %v2468_v27 = vadd.f32 %v773_v40, %v718_v5  ;;  %v854_v26 = vsel %vm467_vm6, %v2298_v47, %v2418_v7  ;;  %v771_v9 = vmul.f32 %v2262_v54, %v738_v36  ;;  %v2658_v5 = vld [vmem:[#allocation30_spill] sm:$0xff] }
 0x1ab   :  { %v551_v44 = vadd.f32 %v2210_v31, %v504_v0  ;;  %v560_v59 = vpop.permute.xlu1 %559  ;;  %v891_v12 = vadd.f32 %v883_v25, %v775_v2  ;;  %v946_v39 = vpop.permute.xlu0 %945  ;;  %v550_v13 = vadd.f32 %v2207_v52, %v503_v56  ;;  %v770_v52 = vmul.f32 %v2259_v24, %v740_v22  ;;  %v2655_v24 = vld [vmem:[#allocation21_spill] sm:$0xff]  ;;  %v2661_v56 = vld [vmem:[#allocation24_spill] sm:$0xff] }
 0x1ac   :  { %v573_v50 = vsel %vm569_vm7, %v560_v59, %v2033_v32  ;;  %v575_v48 = vsel %vm569_vm7, %v556_v4, %v560_v59  ;;  %v955_v47 = vsel %vm569_vm7, %v2239_v20, %v946_v39  ;;  %v772_v32 = vmul.f32 %v2150_v19, %v736_v3 }
 0x1ad   :  { %v615_v41 = vadd.f32 %v2361_v57, %v551_v44  ;;  %v605_v31 = vmul.f32 %v2292_v61, %v575_v48  ;;  %v606_v6 = vmul.f32 %v2296_v15, %v573_v50  ;;  %v930_v43 = vadd.f32 %v2216_v58, %v891_v12  ;;  %v2662_v44 = vld [vmem:[#allocation25_spill] sm:$0xff] }
 0x1ae   :  { %v892_v4 = vadd.f32 %v884_v11, %v2653_v1  ;;  %v985_v10 = vmul.f32 %v2654_v53, %v955_v47  ;;  %v887_v61 = vmul.f32 %v2278_v16, %v856_v60  ;;  %v888_v15 = vmul.f32 %v2301_v42, %v854_v26 }
 0x1af   :  { %v678_v55 = vadd.f32 %v670_v62, %v615_v41  ;;  %v613_v23 = vadd.f32 %v605_v31, %v549_v38  ;;  %v614_v33 = vadd.f32 %v606_v6, %v550_v13  ;;  %v948_v57 = vpop.permute.xlu1 %947  ;;  %v848_v63 = vpop.permute.xlu0 %847  ;;  %v774_v22 = vadd.f32 %v2415_v29, %v711_v14 }
 0x1b0   :  { %v851_v58 = vsel %vm467_vm6, %v844_v49, %v848_v63  ;;  %v857_v19 = vsel %vm467_vm6, %v848_v63, %v2650_v21  ;;  %v956_v16 = vsel %vm569_vm7, %v2656_v28, %v948_v57  ;;  %v2659_v49 = vld [vmem:[#allocation17_spill] sm:$0xff]  ;;  %v993_v21 = vadd.f32 %v985_v10, %v930_v43  ;;  %v2665_v43 = vld [vmem:[#allocation19_spill] sm:$0xff] }
 0x1b1   :  { %v717_v54 = vadd.f32 %v2655_v24, %v678_v55  ;;  %v676_v62 = vadd.f32 %v668_v18, %v613_v23  ;;  %v677_v36 = vadd.f32 %v2411_v37, %v614_v33  ;;  %v882_v42 = vmul.f32 %v2657_v46, %v857_v19  ;;  %v2667_v55 = vld [vmem:[#allocation26_spill] sm:$0xff]  ;;  %v2668_v10 = vld [vmem:[#allocation33_spill] sm:$0xff] }
 0x1b2   :  { %v885_v40 = vmul.f32 %v2658_v5, %v851_v58  ;;  %v931_v17 = vadd.f32 %v2659_v49, %v892_v4  ;;  %v989_v60 = vmul.f32 %v2654_v53, %v956_v16  ;;  %v2670_v58 = vld [vmem:[#allocation16_spill] sm:$0xff] }
 0x1b3   :  { %v716_v34 = vadd.f32 %v2660_v35, %v677_v36  ;;  %v850_v25 = vpop.permute.xlu1 %849  ;;  %v715_v18 = vadd.f32 %v2661_v56, %v676_v62  ;;  %v938_v51 = vpop.permute.xlu0 %937  ;;  %v780_v37 = vadd.f32 %v772_v32, %v717_v54  ;;  %v890_v0 = vadd.f32 %v882_v42, %v774_v22  ;;  %v2666_v32 = vld [vmem:[#allocation23_spill] sm:$0xff]  ;;  %v2672_v35 = vld [vmem:[#allocation36_spill] sm:$0xff] }
 0x1b4   :  { %v893_v29 = vadd.f32 %v885_v40, %v777_v8  ;;  %v852_v14 = vsel %vm467_vm6, %v2418_v7, %v850_v25  ;;  %v858_v2 = vsel %vm467_vm6, %v850_v25, %v2652_v30  ;;  %v957_v8 = vsel %vm569_vm7, %v938_v51, %v2239_v20  ;;  %v2663_v7 = vld [vmem:[#allocation28_spill] sm:$0xff]  ;;  %v2664_v30 = vld [vmem:[#allocation31_spill] sm:$0xff] }
 0x1b5   :  { %v779_v3 = vadd.f32 %v771_v9, %v716_v34  ;;  %v778_v11 = vadd.f32 %v770_v52, %v715_v18  ;;  %v886_v26 = vmul.f32 %v2657_v46, %v858_v2  ;;  %v889_v38 = vmul.f32 %v2658_v5, %v852_v14  ;;  %v2674_v56 = vld [vmem:[#allocation20_spill] sm:$0xff] }
 0x1b6   :  { %v929_v59 = vadd.f32 %v2662_v44, %v890_v0  ;;  %v896_v12 = vadd.f32 %v888_v15, %v780_v37  ;;  %v1023_v13 = vadd.f32 %v2663_v7, %v993_v21  ;;  %v984_v47 = vmul.f32 %v2664_v30, %v957_v8  ;;  %v2673_v21 = vld [vmem:[#allocation37_spill] sm:$0xff] }
 0x1b7   :  { %v895_v50 = vadd.f32 %v887_v61, %v779_v3  ;;  %v894_v48 = vadd.f32 %v886_v26, %v778_v11  ;;  %v940_v41 = vpop.permute.xlu1 %939  ;;  %v950_v31 = vpop.permute.xlu0 %949  ;;  %v932_v52 = vadd.f32 %v2665_v43, %v893_v29  ;;  %v897_v53 = vadd.f32 %v889_v38, %v2468_v27  ;;  %v2669_v61 = vld [vmem:[#allocation34_spill] sm:$0xff] }
 0x1b8   :  { %v958_v6 = vsel %vm569_vm7, %v940_v41, %v2656_v28  ;;  %v953_v9 = vsel %vm569_vm7, %v946_v39, %v950_v31  ;;  %v959_v20 = vsel %vm569_vm7, %v950_v31, %v938_v51  ;;  %v992_v4 = vadd.f32 %v984_v47, %v929_v59  ;;  %v2671_v39 = vld [vmem:[#allocation32_spill] sm:$0xff]  ;;  %v1443_v43 = vld [vmem:[%s2577_s6] ss:$0 sm:$0xff] }
 0x1b9   :  { %v934_v1 = vadd.f32 %v2666_v32, %v895_v50  ;;  %v933_v23 = vadd.f32 %v2667_v55, %v894_v48  ;;  %v988_v33 = vmul.f32 %v2664_v30, %v958_v6  ;;  %v986_v63 = vmul.f32 %v2668_v10, %v953_v9 }
 0x1ba   :  { %v987_v15 = vmul.f32 %v2669_v61, %v959_v20  ;;  %v935_v19 = vadd.f32 %v2670_v58, %v896_v12  ;;  %v1022_v54 = vadd.f32 %v2671_v39, %v992_v4  ;;  %v1031_v22 = vmax.f32 %v1023_v13, 0.0 }
 0x1bb   :  { %v997_v24 = vadd.f32 %v989_v60, %v934_v1  ;;  %v996_v62 = vadd.f32 %v988_v33, %v933_v23  ;;  %v952_v36 = vpop.permute.xlu1 %951  ;;  %v994_v28 = vadd.f32 %v986_v63, %v931_v17  ;;  %v936_v17 = vadd.f32 %v2674_v56, %v897_v53 }
 0x1bc   :  { %v995_v16 = vadd.f32 %v987_v15, %v932_v52  ;;  %v954_v46 = vsel %vm569_vm7, %v948_v57, %v952_v36  ;;  %v960_v27 = vsel %vm569_vm7, %v952_v36, %v940_v41  ;;  %v1030_v5 = vmax.f32 %v1022_v54, 0.0 }
 0x1bd   :  { %v1027_v42 = vadd.f32 %v2663_v7, %v997_v24  ;;  %v1026_v40 = vadd.f32 %v2671_v39, %v996_v62  ;;  %v990_v49 = vmul.f32 %v2668_v10, %v954_v46  ;;  %v1024_v34 = vadd.f32 %v2672_v35, %v994_v28  ;;  %v1603_v10 = vld [vmem:[%s2572_s0] sm:$0xff] }
 0x1be   :  { %v1025_v25 = vadd.f32 %v2673_v21, %v995_v16  ;;  %v991_v18 = vmul.f32 %v2669_v61, %v960_v27  ;;  %v1038_v45 = vmin.f32 %v1030_v5, 6.0  ;;  %v1039_v29 = vmin.f32 %v1031_v22, 6.0 }
 0x1bf   :  { %v1034_v51 = vmax.f32 %v1026_v40, 0.0  ;;  %v998_v57 = vadd.f32 %v990_v49, %v935_v19  ;;  %v1035_v37 = vmax.f32 %v1027_v42, 0.0  ;;  %v1032_v2 = vmax.f32 %v1024_v34, 0.0 }
 0x1c0   :  { %v999_v0 = vadd.f32 %v991_v18, %v936_v17  ;;  %v1033_v26 = vmax.f32 %v1025_v25, 0.0 }
 0x1c1   :  { %v1042_v14 = vmin.f32 %v1034_v51, 6.0  ;;  %v1028_v3 = vadd.f32 %v2672_v35, %v998_v57  ;;  %v1043_v60 = vmin.f32 %v1035_v37, 6.0  ;;  %v1040_v12 = vmin.f32 %v1032_v2, 6.0 }
 0x1c2   :  { %v1029_v11 = vadd.f32 %v2673_v21, %v999_v0  ;;  %v1041_v13 = vmin.f32 %v1033_v26, 6.0 }
 0x1c3   :  { %v1036_v38 = vmax.f32 %v1028_v3, 0.0  ;;  %v1047_v44 = vpack.c.bf16 %v1043_v60, %v1039_v29  ;;  %v1046_v59 = vpack.c.bf16 %v1042_v14, %v1038_v45 }
 0x1c4   :  { %v1037_v8 = vmax.f32 %v1029_v11, 0.0 }
 0x1c5   :  { %v1044_v7 = vmin.f32 %v1036_v38, 6.0  ;;  %1345 = vmatprep.mubr.bf16.mxu0 %v1047_v44 }
 0x1c6   :  { %1346 = vmatmul.mubr.bf16.vlgmr.msra.gmra.mxu0 %v1046_v59  ;;  %v1045_v50 = vmin.f32 %v1037_v8, 6.0 }
 0x1c7   :  { %v1048_v48 = vpack.c.bf16 %v1044_v7, %v1040_v12 }
 0x1c8   :  { %v1049_v30 = vpack.c.bf16 %v1045_v50, %v1041_v13 }
 0x1ca   :  { %1386 = vmatprep.mubr.bf16.mxu1 %v1049_v30 }
 0x1cb   :  { %1387 = vmatmul.mubr.bf16.vlgmr.msra.gmra.mxu1 %v1048_v48 }
 0x286   :  { %v1492_v47 = vpop.f32.mrf.mxu0 }
 0x288   :  { %v1493_v41 = vpop.f32.mrf.mxu0 }
 0x289   :  { %v1494_v31 = vadd.f32 %v1493_v41, %v1492_v47 }
 0x28a   :  { %v1495_v6 = vpop.f32.mrf.mxu0 }
 0x28b   :  { %v1514_v52 = vpop.f32.mrf.mxu1  ;;  %v1348_v32 = vadd.f32 %v1494_v31, %v1443_v43 }
 0x28c   :  { %v1496_v9 = vpop.f32.mrf.mxu0 }
 0x28d   :  { %v1515_v20 = vpop.f32.mrf.mxu1  ;;  %v1497_v1 = vadd.f32 %v1496_v9, %v1495_v6 }
 0x28e   :  { %v1516_v4 = vadd.f32 %v1515_v20, %v1514_v52 }
 0x28f   :  { %v1517_v55 = vpop.f32.mrf.mxu1  ;;  %v1351_v53 = vadd.f32 %v1497_v1, %v1443_v43 }
 0x290   :  { %v1389_v23 = vadd.f32 %v1516_v4, %v1348_v32 }
 0x291   :  { %v1518_v33 = vpop.f32.mrf.mxu1 }
 0x292   :  { %v1395_v63 = vadd.f32 %v1603_v10, %v1389_v23  ;;  %v1519_v61 = vadd.f32 %v1518_v33, %v1517_v55 }
 0x294   :  { %1397 = vst [vmem:[%s2578_s7] sm:$0xff] %v1395_v63  ;;  %v1392_v15 = vadd.f32 %v1519_v61, %v1351_v53 }
 0x29b   :  { %v1604_v58 = vld [vmem:[%s2572_s0 + $0x8] sm:$0xff] }
 0x29c   :  { %v1396_v19 = vadd.f32 %v1604_v58, %v1392_v15 }
 0x29e   :  { %1398 = vst [vmem:[%s2578_s7 + $0x8] sm:$0xff] %v1396_v19 }

</bundles_post_ra>
